<compile_context>
chip_gen: v5e
topology: v5e:2x2
jax: 0.10.0
libtpu: 0.0.40
codegen_flags: <defaults>
</compile_context>

<pallas_src>
import functools

import jax
import jax.numpy as jnp
from jax.experimental import pallas as pl
from jax.experimental.pallas import tpu as pltpu

LANE = 128  # TPU lane width: hidden (inter-layer) dims are padded to a multiple of this.


def _round_up(n, m):
    return ((n + m - 1) // m) * m


def _pad2d(a, rows, cols, dtype):
    a = a.astype(dtype)
    return jnp.pad(a, ((0, rows - a.shape[0]), (0, cols - a.shape[1])))


def _num_tensorcores_per_chip():
    """Best-effort TensorCore count per chip: v7x / megacore (v4, v5p) -> 2, v5e/v6e -> 1."""
    try:
        kind = jax.devices()[0].device_kind.lower()
    except Exception:
        return 1
    return 2 if any(tag in kind for tag in ("v7", "7x", "v4", "v5p")) else 1


def _choose_batch_tile(batch, block_b, n_cores):
    """Batch tile: >= n_cores grid steps (megacore sharding), <= block_b rows per step,
    always a multiple of 8, and chosen so Bp = steps*tb stays close to B."""
    block_b = max(8, _round_up(block_b, 8))
    n_steps = max(n_cores, pl.cdiv(batch, block_b))
    tb = _round_up(pl.cdiv(batch, n_steps), 8)
    return min(tb, max(8, _round_up(batch, 8)))


def _resident_spec(shape):
    """BlockSpec for an operand that is identical for every grid step (weights/biases).

    Constant-index operands are fetched once, so single-buffer them: the default
    double buffer is pure VMEM waste (matters for v7x's 64 MiB VMEM at production
    hidden sizes; harmless at demo sizes).
    """
    index_map = lambda i: (0, 0)
    try:
        return pl.BlockSpec(shape, index_map, pipeline_mode=pl.Buffered(1))
    except TypeError:  # older JAX without pipeline_mode on BlockSpec
        return pl.BlockSpec(shape, index_map)


def _mlp_kernel(x_ref, w1_ref, b1_ref, w2_ref, b2_ref, w3_ref, b3_ref, o_ref):
    """Fused 3-layer MLP: relu(relu(x@W1+b1)@W2+b2)@W3+b3.

    x arrives f32 and is cast to bf16 in-kernel (VPU has plenty of slack under the
    MXU); weights are bf16 MXU operands; accumulation, bias-add and ReLU stay f32
    (v5e has no bf16 VPU datapath).
    """
    x = x_ref[...].astype(jnp.bfloat16)                                # bf16 [tb, in_f]

    h1 = jnp.dot(x, w1_ref[...], preferred_element_type=jnp.float32)  # f32 [tb, h1_p]
    h1 = jnp.maximum(h1 + b1_ref[...], 0.0)

    h2 = jnp.dot(h1.astype(jnp.bfloat16), w2_ref[...],
                 preferred_element_type=jnp.float32)                   # f32 [tb, h2_p]
    h2 = jnp.maximum(h2 + b2_ref[...], 0.0)

    out = jnp.dot(h2.astype(jnp.bfloat16), w3_ref[...],
                  preferred_element_type=jnp.float32)                  # f32 [tb, out_f]
    o_ref[...] = (out + b3_ref[...]).astype(o_ref.dtype)


def prepare_params(w1, b1, w2, b2, w3, b3):
    """One-time parameter prep (kept OUTSIDE the per-step jitted forward).

    Hidden feature dims are zero-padded to a multiple of 128 (lane-dense inter-layer
    matmuls); weights are cast to bf16 (MXU operands); biases stay f32 (VPU bias-add).
    Layer-1 input rows and layer-3 output columns are left UNPADDED to match the
    unpadded x / output blocks.  Zero padding is exact through bias+ReLU.
    """
    in_f, h1_f = w1.shape
    h2_f, out_f = w2.shape[1], w3.shape[1]
    h1_p, h2_p = _round_up(h1_f, LANE), _round_up(h2_f, LANE)

    w1p = _pad2d(w1, in_f, h1_p, jnp.bfloat16)
    w2p = _pad2d(w2, h1_p, h2_p, jnp.bfloat16)
    w3p = _pad2d(w3, h2_p, out_f, jnp.bfloat16)
    b1p = _pad2d(b1, 1, h1_p, jnp.float32)
    b2p = _pad2d(b2, 1, h2_p, jnp.float32)
    b3p = b3.astype(jnp.float32)
    return w1p, b1p, w2p, b2p, w3p, b3p


@functools.partial(jax.jit, static_argnames=("block_b",))
def simple_mlp_forward(x, params, block_b=512):
    """x: [B, input_size] f32 -> [B, output_size] f32 (same dtype as x)."""
    w1p, b1p, w2p, b2p, w3p, b3p = params
    B, in_f = x.shape
    out_f = w3p.shape[1]

    tb = _choose_batch_tile(B, block_b, _num_tensorcores_per_chip())
    steps = pl.cdiv(B, tb)
    Bp = steps * tb

    xp = jnp.pad(x, ((0, Bp - B), (0, 0))) if Bp != B else x

    flops = 2 * Bp * (in_f * w1p.shape[1]
                      + w2p.shape[0] * w2p.shape[1]
                      + w3p.shape[0] * out_f)
    bytes_accessed = (xp.size * xp.dtype.itemsize
                      + (w1p.size + w2p.size + w3p.size) * 2
                      + (b1p.size + b2p.size + b3p.size) * 4
                      + Bp * out_f * x.dtype.itemsize)

    out = pl.pallas_call(
        _mlp_kernel,
        out_shape=jax.ShapeDtypeStruct((Bp, out_f), x.dtype),
        grid_spec=pl.GridSpec(
            grid=(steps,),
            in_specs=[
                pl.BlockSpec((tb, in_f), lambda i: (i, 0)),   # x batch tile, unpadded cols
                _resident_spec(w1p.shape), _resident_spec(b1p.shape),
                _resident_spec(w2p.shape), _resident_spec(b2p.shape),
                _resident_spec(w3p.shape), _resident_spec(b3p.shape),
            ],
            out_specs=pl.BlockSpec((tb, out_f), lambda i: (i, 0)),  # unpadded output cols
        ),
        compiler_params=pltpu.CompilerParams(
            dimension_semantics=("parallel",),
            vmem_limit_bytes=32 * 1024 * 1024,
        ),
        cost_estimate=pl.CostEstimate(
            flops=flops, transcendentals=0, bytes_accessed=bytes_accessed),
    )(xp, w1p, b1p, w2p, b2p, w3p, b3p)

    return out[:B] if Bp != B else out


def init_linear_params(key, in_features, out_features, dtype=jnp.float32):
    """Deterministic init mimicking PyTorch nn.Linear defaults."""
    k_w, k_b = jax.random.split(key)
    bound = 1.0 / jnp.sqrt(in_features)
    # Stored transposed vs PyTorch: [in_features, out_features]
    w = jax.random.uniform(k_w, (in_features, out_features), dtype, -bound, bound)
    b = jax.random.uniform(k_b, (1, out_features), dtype, -bound, bound)
    return w, b


def reference_mlp(x, w1, b1, w2, b2, w3, b3):
    h1 = jnp.maximum(x @ w1 + b1, 0.0)
    h2 = jnp.maximum(h1 @ w2 + b2, 0.0)
    return h2 @ w3 + b3


if __name__ == "__main__":
    # Small shapes consistent with simpleMLP(input_size, hidden_size1, hidden_size2, output_size).
    batch = 64
    input_size, hidden1, hidden2, output_size = 32, 64, 64, 16

    key = jax.random.PRNGKey(0)
    kx, k1, k2, k3 = jax.random.split(key, 4)

    x = jax.random.normal(kx, (batch, input_size), jnp.float32)
    w1, b1 = init_linear_params(k1, input_size, hidden1)
    w2, b2 = init_linear_params(k2, hidden1, hidden2)
    w3, b3 = init_linear_params(k3, hidden2, output_size)

    # One-time parameter prep (padding / bf16 cast hoisted out of the jitted forward).
    params = prepare_params(w1, b1, w2, b2, w3, b3)

    out = simple_mlp_forward(x, params)
    out = jax.block_until_ready(out)

    ref = reference_mlp(x, w1, b1, w2, b2, w3, b3)  # f32 reference
    assert out.shape == (batch, output_size)
    # bf16 MXU operands with f32 accumulation -> compare loosely against the f32 reference.
    assert jnp.allclose(out, ref, atol=5e-2, rtol=5e-2), "mismatch vs reference"

    print("KERNEL_OK")
</pallas_src>

<mosaic_0001>
module attributes {stable_mosaic.version = 11 : i64} {
  func.func @_mlp_kernel(%arg0: i32, %arg1: memref<64x32xf32, #tpu.memory_space<vmem>>, %arg2: memref<32x128xbf16, #tpu.memory_space<vmem>>, %arg3: memref<1x128xf32, #tpu.memory_space<vmem>>, %arg4: memref<128x128xbf16, #tpu.memory_space<vmem>>, %arg5: memref<1x128xf32, #tpu.memory_space<vmem>>, %arg6: memref<128x16xbf16, #tpu.memory_space<vmem>>, %arg7: memref<1x16xf32, #tpu.memory_space<vmem>>, %arg8: memref<64x16xf32, #tpu.memory_space<vmem>>) attributes {dimension_semantics = [#tpu.dimension_semantics<parallel>], iteration_bounds = array<i64: 1>, scalar_prefetch = 0 : i64, scratch_operands = 0 : i64, tpu.core_type = #tpu.core_type<tc>, window_params = [{transform_indices = @transform_0, window_bounds = array<i64: 64, 32>}, {pipeline_mode = #tpu.pipeline_mode<synchronous>, transform_indices = @transform_1, window_bounds = array<i64: 32, 128>}, {pipeline_mode = #tpu.pipeline_mode<synchronous>, transform_indices = @transform_2, window_bounds = array<i64: 1, 128>}, {pipeline_mode = #tpu.pipeline_mode<synchronous>, transform_indices = @transform_3, window_bounds = array<i64: 128, 128>}, {pipeline_mode = #tpu.pipeline_mode<synchronous>, transform_indices = @transform_4, window_bounds = array<i64: 1, 128>}, {pipeline_mode = #tpu.pipeline_mode<synchronous>, transform_indices = @transform_5, window_bounds = array<i64: 128, 16>}, {pipeline_mode = #tpu.pipeline_mode<synchronous>, transform_indices = @transform_6, window_bounds = array<i64: 1, 16>}, {transform_indices = @transform_7, window_bounds = array<i64: 64, 16>}]} {
    %c0 = arith.constant 0 : index
    %c0_0 = arith.constant 0 : index
    %0 = vector.load %arg1[%c0, %c0_0] : memref<64x32xf32, #tpu.memory_space<vmem>>, vector<64x32xf32>
    %1 = arith.truncf %0 : vector<64x32xf32> to vector<64x32xbf16>
    %c0_1 = arith.constant 0 : index
    %c0_2 = arith.constant 0 : index
    %2 = vector.load %arg2[%c0_1, %c0_2] : memref<32x128xbf16, #tpu.memory_space<vmem>>, vector<32x128xbf16>
    %cst = arith.constant dense<0.000000e+00> : vector<64x128xf32>
    %3 = tpu.matmul %1, %2, %cst {dimension_numbers = #tpu.dot_dimension_numbers<[1], [0], [0], [1], [0, 0, 1, 1], [], []>} : vector<64x32xbf16>, vector<32x128xbf16>, vector<64x128xf32> -> vector<64x128xf32>
    %c0_3 = arith.constant 0 : index
    %c0_4 = arith.constant 0 : index
    %4 = vector.load %arg3[%c0_3, %c0_4] : memref<1x128xf32, #tpu.memory_space<vmem>>, vector<1x128xf32>
    %5 = vector.broadcast %4 : vector<1x128xf32> to vector<64x128xf32>
    %6 = arith.addf %3, %5 : vector<64x128xf32>
    %cst_5 = arith.constant 0.000000e+00 : f32
    %7 = vector.broadcast %cst_5 : f32 to vector<64x128xf32>
    %8 = arith.maximumf %6, %7 : vector<64x128xf32>
    %9 = arith.truncf %8 : vector<64x128xf32> to vector<64x128xbf16>
    %c0_6 = arith.constant 0 : index
    %c0_7 = arith.constant 0 : index
    %10 = vector.load %arg4[%c0_6, %c0_7] : memref<128x128xbf16, #tpu.memory_space<vmem>>, vector<128x128xbf16>
    %cst_8 = arith.constant dense<0.000000e+00> : vector<64x128xf32>
    %11 = tpu.matmul %9, %10, %cst_8 {dimension_numbers = #tpu.dot_dimension_numbers<[1], [0], [0], [1], [0, 0, 1, 1], [], []>} : vector<64x128xbf16>, vector<128x128xbf16>, vector<64x128xf32> -> vector<64x128xf32>
    %c0_9 = arith.constant 0 : index
    %c0_10 = arith.constant 0 : index
    %12 = vector.load %arg5[%c0_9, %c0_10] : memref<1x128xf32, #tpu.memory_space<vmem>>, vector<1x128xf32>
    %13 = vector.broadcast %12 : vector<1x128xf32> to vector<64x128xf32>
    %14 = arith.addf %11, %13 : vector<64x128xf32>
    %cst_11 = arith.constant 0.000000e+00 : f32
    %15 = vector.broadcast %cst_11 : f32 to vector<64x128xf32>
    %16 = arith.maximumf %14, %15 : vector<64x128xf32>
    %17 = arith.truncf %16 : vector<64x128xf32> to vector<64x128xbf16>
    %c0_12 = arith.constant 0 : index
    %c0_13 = arith.constant 0 : index
    %18 = vector.load %arg6[%c0_12, %c0_13] : memref<128x16xbf16, #tpu.memory_space<vmem>>, vector<128x16xbf16>
    %cst_14 = arith.constant dense<0.000000e+00> : vector<64x16xf32>
    %19 = tpu.matmul %17, %18, %cst_14 {dimension_numbers = #tpu.dot_dimension_numbers<[1], [0], [0], [1], [0, 0, 1, 1], [], []>} : vector<64x128xbf16>, vector<128x16xbf16>, vector<64x16xf32> -> vector<64x16xf32>
    %c0_15 = arith.constant 0 : index
    %c0_16 = arith.constant 0 : index
    %20 = vector.load %arg7[%c0_15, %c0_16] : memref<1x16xf32, #tpu.memory_space<vmem>>, vector<1x16xf32>
    %21 = vector.broadcast %20 : vector<1x16xf32> to vector<64x16xf32>
    %22 = arith.addf %19, %21 : vector<64x16xf32>
    %c0_17 = arith.constant 0 : index
    %c0_18 = arith.constant 0 : index
    %23 = vector.load %arg8[%c0_17, %c0_18] : memref<64x16xf32, #tpu.memory_space<vmem>>, vector<64x16xf32>
    tpu.vector_store %arg8[%c0_17, %c0_18], %22 {strides = array<i32>} : memref<64x16xf32, #tpu.memory_space<vmem>>, vector<64x16xf32>,
    return
  }
  func.func @transform_0(%arg0: i32) -> (i32, i32) {
    %c0_i32 = arith.constant 0 : i32
    %c0_i32_0 = arith.constant 0 : i32
    return %arg0, %c0_i32 : i32, i32
  }
  func.func @transform_1(%arg0: i32) -> (i32, i32) {
    %c0_i32 = arith.constant 0 : i32
    %c0_i32_0 = arith.constant 0 : i32
    %c0_i32_1 = arith.constant 0 : i32
    return %c0_i32, %c0_i32_0 : i32, i32
  }
  func.func @transform_2(%arg0: i32) -> (i32, i32) {
    %c0_i32 = arith.constant 0 : i32
    %c0_i32_0 = arith.constant 0 : i32
    %c0_i32_1 = arith.constant 0 : i32
    return %c0_i32, %c0_i32_0 : i32, i32
  }
  func.func @transform_3(%arg0: i32) -> (i32, i32) {
    %c0_i32 = arith.constant 0 : i32
    %c0_i32_0 = arith.constant 0 : i32
    %c0_i32_1 = arith.constant 0 : i32
    return %c0_i32, %c0_i32_0 : i32, i32
  }
  func.func @transform_4(%arg0: i32) -> (i32, i32) {
    %c0_i32 = arith.constant 0 : i32
    %c0_i32_0 = arith.constant 0 : i32
    %c0_i32_1 = arith.constant 0 : i32
    return %c0_i32, %c0_i32_0 : i32, i32
  }
  func.func @transform_5(%arg0: i32) -> (i32, i32) {
    %c0_i32 = arith.constant 0 : i32
    %c0_i32_0 = arith.constant 0 : i32
    %c0_i32_1 = arith.constant 0 : i32
    return %c0_i32, %c0_i32_0 : i32, i32
  }
  func.func @transform_6(%arg0: i32) -> (i32, i32) {
    %c0_i32 = arith.constant 0 : i32
    %c0_i32_0 = arith.constant 0 : i32
    %c0_i32_1 = arith.constant 0 : i32
    return %c0_i32, %c0_i32_0 : i32, i32
  }
  func.func @transform_7(%arg0: i32) -> (i32, i32) {
    %c0_i32 = arith.constant 0 : i32
    %c0_i32_0 = arith.constant 0 : i32
    return %arg0, %c0_i32 : i32, i32
  }
}

</mosaic_0001>

<bundles_post_ra>
// kernel: simple_mlp_forward.1
= control target key start
LH: loop header
LB: loop body
LE: loop exit
PB: predicated region body
PF: predicated region fallthrough
CT: control target
= control target key end

     0   :  { %vm59_vm0 = vcmask 261120   ;;  %vm319_vm1 = vcmask 130048   ;;  %s608_s1 = inlined_call_operand.vmem [shape: bf16[32,128], index: 1, kind: input, shape index: {}]   ;;  %s609_s0 = inlined_call_operand.vmem [shape: f32[64,32], index: 0, kind: input, shape index: {}]   ;;  %s610_s2 = inlined_call_operand.vmem [shape: f32[1,128], index: 2, kind: input, shape index: {}]   ;;  %s611_s3 = inlined_call_operand.vmem [shape: bf16[128,128], index: 3, kind: input, shape index: {}]   ;;  %s612_s4 = inlined_call_operand.vmem [shape: f32[1,128], index: 4, kind: input, shape index: {}]   ;;  %s613_s5 = inlined_call_operand.vmem [shape: bf16[128,16], index: 5, kind: input, shape index: {}]   ;;  %s614_s6 = inlined_call_operand.vmem [shape: f32[1,16], index: 6, kind: input, shape index: {}]   ;;  %s615_s7 = inlined_call_operand.vmem [shape: f32[64,16], index: 7, kind: output, shape index: {}]  }
   0x1   :  { %v409_v0 = vld [vmem:[%s608_s1 + $0x8] sm:$0xff]  ;;  %v408_v1 = vld [vmem:[%s608_s1] sm:$0xff]  ;;  %v29_v5 = vld [vmem:[%s609_s0 + $0x10] sm:$0xff] }
   0x2   :  { %78 = vmatpush.bf16.msra.mxu0 %v409_v0  ;;  %v27_v2 = vld [vmem:[%s609_s0] sm:$0xff]  ;;  %v28_v3 = vld [vmem:[%s609_s0 + $0x8] sm:$0xff]  ;;  %v30_v6 = vld [vmem:[%s609_s0 + $0x18] sm:$0xff] }
   0x3   :  { %v35_v4 = vpack.c.bf16 %v28_v3, %v27_v2  ;;  %v36_v7 = vpack.c.bf16 %v30_v6, %v29_v5  ;;  %v417_v8 = vld [vmem:[%s611_s3 + $0x38] sm:$0xff]  ;;  %v416_v9 = vld [vmem:[%s611_s3 + $0x30] sm:$0xff]  ;;  %v415_v10 = vld [vmem:[%s611_s3 + $0x28] sm:$0xff] }
   0x4   :  { %181 = vmatpush.bf16.msra.mxu1 %v417_v8  ;;  %426 = vmatpush.bf16.msra.mxu3 %v417_v8  ;;  %v31_v11 = vld [vmem:[%s609_s0 + $0x20] sm:$0xff]  ;;  %v32_v12 = vld [vmem:[%s609_s0 + $0x28] sm:$0xff]  ;;  %v33_v15 = vld [vmem:[%s609_s0 + $0x30] sm:$0xff] }
   0x5   :  { %v414_v13 = vld [vmem:[%s611_s3 + $0x20] sm:$0xff]  ;;  %v37_v14 = vpack.c.bf16 %v32_v12, %v31_v11  ;;  %v34_v16 = vld [vmem:[%s609_s0 + $0x38] sm:$0xff]  ;;  %v412_v19 = vld [vmem:[%s611_s3 + $0x10] sm:$0xff] }
   0x6   :  { %79 = vmatpush.bf16.msra.mxu0 %v408_v1  ;;  %v38_v17 = vpack.c.bf16 %v34_v16, %v33_v15  ;;  %v413_v18 = vld [vmem:[%s611_s3 + $0x18] sm:$0xff]  ;;  %v411_v20 = vld [vmem:[%s611_s3 + $0x8] sm:$0xff]  ;;  %v410_v21 = vld [vmem:[%s611_s3] sm:$0xff] }
   0x7   :  { %v442_v23 = vld [vmem:[%s610_s2] ss:$0 sm:$0xff]  ;;  %v425_v37 = vld [vmem:[%s613_s5 + $0x38] sm:$0xff]  ;;  %v424_v39 = vld [vmem:[%s613_s5 + $0x30] sm:$0xff] }
   0x8   :  { %182 = vmatpush.bf16.msra.mxu1 %v416_v9  ;;  %427 = vmatpush.bf16.msra.mxu3 %v416_v9  ;;  %v423_v40 = vld [vmem:[%s613_s5 + $0x28] sm:$0xff]  ;;  %v422_v44 = vld [vmem:[%s613_s5 + $0x20] sm:$0xff]  ;;  %v421_v55 = vld [vmem:[%s613_s5 + $0x18] sm:$0xff] }
   0x9   :  { %340 = vmatmul.msk.bf16.vlgmr.msra.gmra.mxu0 %vm59_vm0, %v35_v4  ;;  %434 = vmatpush.bf16.msra.mxu2 %v425_v37  ;;  %v420_v56 = vld [vmem:[%s613_s5 + $0x10] sm:$0xff]  ;;  %v419_v57 = vld [vmem:[%s613_s5 + $0x8] sm:$0xff]  ;;  %v418_v58 = vld [vmem:[%s613_s5] sm:$0xff] }
   0xa   :  { %v443_v60 = vld [vmem:[%s612_s4] ss:$0 sm:$0xff] }
   0xc   :  { %183 = vmatpush.bf16.msra.mxu1 %v415_v10  ;;  %428 = vmatpush.bf16.msra.mxu3 %v415_v10 }
   0xd   :  { %435 = vmatpush.bf16.msra.mxu2 %v424_v39 }
  0x10   :  { %184 = vmatpush.bf16.msra.mxu1 %v414_v13  ;;  %429 = vmatpush.bf16.msra.mxu3 %v414_v13 }
  0x11   :  { %436 = vmatpush.bf16.msra.mxu2 %v423_v40 }
  0x14   :  { %185 = vmatpush.bf16.msra.mxu1 %v413_v18  ;;  %430 = vmatpush.bf16.msra.mxu3 %v413_v18 }
  0x15   :  { %437 = vmatpush.bf16.msra.mxu2 %v422_v44 }
  0x18   :  { %186 = vmatpush.bf16.msra.mxu1 %v412_v19  ;;  %431 = vmatpush.bf16.msra.mxu3 %v412_v19 }
  0x19   :  { %341 = vmatmul.msk.bf16.gmra.mxu0 %vm59_vm0, %v36_v7  ;;  %438 = vmatpush.bf16.msra.mxu2 %v421_v55 }
  0x1c   :  { %187 = vmatpush.bf16.msra.mxu1 %v411_v20  ;;  %432 = vmatpush.bf16.msra.mxu3 %v411_v20 }
  0x1d   :  { %439 = vmatpush.bf16.msra.mxu2 %v420_v56 }
  0x20   :  { %188 = vmatpush.bf16.msra.mxu1 %v410_v21  ;;  %433 = vmatpush.bf16.msra.mxu3 %v410_v21 }
  0x21   :  { %440 = vmatpush.bf16.msra.mxu2 %v419_v57 }
  0x24   :  { %290 = vmatpush.bf16.msrb.mxu1 %v425_v37 }
  0x25   :  { %441 = vmatpush.bf16.msra.mxu2 %v418_v58 }
  0x28   :  { %291 = vmatpush.bf16.msrb.mxu1 %v424_v39 }
  0x29   :  { %342 = vmatmul.msk.bf16.gmra.mxu0 %vm59_vm0, %v37_v14 }
  0x2c   :  { %292 = vmatpush.bf16.msrb.mxu1 %v423_v40 }
  0x30   :  { %293 = vmatpush.bf16.msrb.mxu1 %v422_v44 }
  0x34   :  { %294 = vmatpush.bf16.msrb.mxu1 %v421_v55 }
  0x38   :  { %295 = vmatpush.bf16.msrb.mxu1 %v420_v56 }
  0x39   :  { %343 = vmatmul.msk.bf16.gmra.mxu0 %vm59_vm0, %v38_v17 }
  0x3c   :  { %296 = vmatpush.bf16.msrb.mxu1 %v419_v57 }
  0x40   :  { %297 = vmatpush.bf16.msrb.mxu1 %v418_v58 }
  0x86   :  { %v81_v22 = vpop.f32.mrf.mxu0 }
  0x87   :  { %v82_v24 = vadd.f32 %v442_v23, %v81_v22 }
  0x89   :  { %v101_v27 = vmax.f32 %v82_v24, 0.0  ;;  %v444_v24 = vld [vmem:[%s614_s6] ss:$0 sm:$0xff] }
  0x8e   :  { %v83_v25 = vpop.f32.mrf.mxu0 }
  0x8f   :  { %v84_v26 = vadd.f32 %v442_v23, %v83_v25 }
  0x91   :  { %v102_v28 = vmax.f32 %v84_v26, 0.0 }
  0x93   :  { %v109_v29 = vpack.c.bf16 %v102_v28, %v101_v27 }
  0x95   :  { %189 = vmatmul.bf16.vlgmr.msra.gmra.mxu1 %v109_v29 }
  0x96   :  { %v86_v30 = vpop.f32.mrf.mxu0 }
  0x97   :  { %v87_v31 = vadd.f32 %v442_v23, %v86_v30 }
  0x99   :  { %v103_v34 = vmax.f32 %v87_v31, 0.0 }
  0x9e   :  { %v88_v32 = vpop.f32.mrf.mxu0 }
  0x9f   :  { %v89_v33 = vadd.f32 %v442_v23, %v88_v32 }
  0xa1   :  { %v104_v35 = vmax.f32 %v89_v33, 0.0 }
  0xa3   :  { %v110_v36 = vpack.c.bf16 %v104_v35, %v103_v34 }
  0xa5   :  { %194 = vmatmul.bf16.vlgmr.msra.gmra.mxu3 %v110_v36 }
  0xa6   :  { %v91_v38 = vpop.f32.mrf.mxu0 }
  0xa7   :  { %v92_v41 = vadd.f32 %v442_v23, %v91_v38 }
  0xa9   :  { %v105_v45 = vmax.f32 %v92_v41, 0.0 }
  0xae   :  { %v93_v42 = vpop.f32.mrf.mxu0 }
  0xaf   :  { %v94_v43 = vadd.f32 %v442_v23, %v93_v42 }
  0xb1   :  { %v106_v46 = vmax.f32 %v94_v43, 0.0 }
  0xb3   :  { %v111_v47 = vpack.c.bf16 %v106_v46, %v105_v45 }
  0xb5   :  { %199 = vmatmul.bf16.gmra.mxu3 %v111_v47 }
  0xb6   :  { %v96_v48 = vpop.f32.mrf.mxu0 }
  0xb7   :  { %v97_v49 = vadd.f32 %v442_v23, %v96_v48 }
  0xb9   :  { %v107_v52 = vmax.f32 %v97_v49, 0.0 }
  0xbe   :  { %v98_v50 = vpop.f32.mrf.mxu0 }
  0xbf   :  { %v99_v51 = vadd.f32 %v442_v23, %v98_v50 }
  0xc1   :  { %v108_v53 = vmax.f32 %v99_v51, 0.0 }
  0xc3   :  { %v112_v54 = vpack.c.bf16 %v108_v53, %v107_v52 }
  0xc5   :  { %204 = vmatmul.bf16.gmra.mxu3 %v112_v54 }
 0x112   :  { %v190_v59 = vpop.f32.mrf.mxu1 }
 0x113   :  { %v191_v61 = vadd.f32 %v443_v60, %v190_v59 }
 0x115   :  { %v210_v0 = vmax.f32 %v191_v61, 0.0 }
 0x11a   :  { %v192_v62 = vpop.f32.mrf.mxu1 }
 0x11b   :  { %v193_v63 = vadd.f32 %v443_v60, %v192_v62 }
 0x11d   :  { %v211_v1 = vmax.f32 %v193_v63, 0.0 }
 0x11f   :  { %v218_v2 = vpack.c.bf16 %v211_v1, %v210_v0 }
 0x121   :  { %298 = vmatmul.bf16.vlgmr.msrb.gmra.mxu1 %v218_v2 }
 0x128   :  { %v195_v3 = vpop.f32.mrf.mxu3 }
 0x129   :  { %v196_v4 = vadd.f32 %v443_v60, %v195_v3 }
 0x12b   :  { %v212_v7 = vmax.f32 %v196_v4, 0.0 }
 0x130   :  { %v197_v5 = vpop.f32.mrf.mxu3 }
 0x131   :  { %v198_v6 = vadd.f32 %v443_v60, %v197_v5 }
 0x133   :  { %v213_v8 = vmax.f32 %v198_v6, 0.0 }
 0x135   :  { %v219_v9 = vpack.c.bf16 %v213_v8, %v212_v7 }
 0x137   :  { %303 = vmatmul.bf16.vlgmr.msra.gmra.mxu2 %v219_v9 }
 0x138   :  { %v200_v10 = vpop.f32.mrf.mxu3 }
 0x139   :  { %v201_v11 = vadd.f32 %v443_v60, %v200_v10 }
 0x13b   :  { %v214_v14 = vmax.f32 %v201_v11, 0.0 }
 0x140   :  { %v202_v12 = vpop.f32.mrf.mxu3 }
 0x141   :  { %v203_v13 = vadd.f32 %v443_v60, %v202_v12 }
 0x143   :  { %v215_v15 = vmax.f32 %v203_v13, 0.0 }
 0x145   :  { %v220_v16 = vpack.c.bf16 %v215_v15, %v214_v14 }
 0x147   :  { %308 = vmatmul.bf16.gmra.mxu2 %v220_v16 }
 0x148   :  { %v205_v17 = vpop.f32.mrf.mxu3 }
 0x149   :  { %v206_v18 = vadd.f32 %v443_v60, %v205_v17 }
 0x14b   :  { %v216_v21 = vmax.f32 %v206_v18, 0.0 }
 0x150   :  { %v207_v19 = vpop.f32.mrf.mxu3 }
 0x151   :  { %v208_v20 = vadd.f32 %v443_v60, %v207_v19 }
 0x153   :  { %v217_v22 = vmax.f32 %v208_v20, 0.0 }
 0x155   :  { %v221_v23 = vpack.c.bf16 %v217_v22, %v216_v21 }
 0x157   :  { %313 = vmatmul.bf16.gmra.mxu2 %v221_v23 }
 0x19e   :  { %v299_v25 = vpop.f32.mrf.mxu1 }
 0x19f   :  { %v300_v26 = vadd.f32 %v444_v24, %v299_v25 }
 0x1a1   :  { %320 = vst.msk [vmem:[%s615_s7] sm:$0xff] %vm319_vm1, %v300_v26 }
 0x1a6   :  { %v301_v27 = vpop.f32.mrf.mxu1 }
 0x1a7   :  { %v302_v28 = vadd.f32 %v444_v24, %v301_v27 }
 0x1a9   :  { %321 = vst.msk [vmem:[%s615_s7 + $0x8] sm:$0xff] %vm319_vm1, %v302_v28 }
 0x1ba   :  { %v304_v29 = vpop.f32.mrf.mxu2 }
 0x1bb   :  { %v305_v30 = vadd.f32 %v444_v24, %v304_v29 }
 0x1bd   :  { %322 = vst.msk [vmem:[%s615_s7 + $0x10] sm:$0xff] %vm319_vm1, %v305_v30 }
 0x1c2   :  { %v306_v31 = vpop.f32.mrf.mxu2 }
 0x1c3   :  { %v307_v32 = vadd.f32 %v444_v24, %v306_v31 }
 0x1c5   :  { %323 = vst.msk [vmem:[%s615_s7 + $0x18] sm:$0xff] %vm319_vm1, %v307_v32 }
 0x1ca   :  { %v309_v33 = vpop.f32.mrf.mxu2 }
 0x1cb   :  { %v310_v34 = vadd.f32 %v444_v24, %v309_v33 }
 0x1cd   :  { %324 = vst.msk [vmem:[%s615_s7 + $0x20] sm:$0xff] %vm319_vm1, %v310_v34 }
 0x1d2   :  { %v311_v35 = vpop.f32.mrf.mxu2 }
 0x1d3   :  { %v312_v36 = vadd.f32 %v444_v24, %v311_v35 }
 0x1d5   :  { %325 = vst.msk [vmem:[%s615_s7 + $0x28] sm:$0xff] %vm319_vm1, %v312_v36 }
 0x1da   :  { %v314_v37 = vpop.f32.mrf.mxu2 }
 0x1db   :  { %v315_v38 = vadd.f32 %v444_v24, %v314_v37 }
 0x1dd   :  { %326 = vst.msk [vmem:[%s615_s7 + $0x30] sm:$0xff] %vm319_vm1, %v315_v38 }
 0x1e2   :  { %v316_v39 = vpop.f32.mrf.mxu2 }
 0x1e3   :  { %v317_v40 = vadd.f32 %v444_v24, %v316_v39 }
 0x1e5   :  { %327 = vst.msk [vmem:[%s615_s7 + $0x38] sm:$0xff] %vm319_vm1, %v317_v40 }

</bundles_post_ra>
